<compile_context>
chip_gen: v7x
topology: tpu7x:2x2x1
jax: 0.10.0
libtpu: 0.0.40
codegen_flags: <defaults>
</compile_context>

<pallas_src>
import functools

import jax
import jax.numpy as jnp
from jax import lax
from jax.experimental import pallas as pl
from jax.experimental.pallas import tpu as pltpu


# ----------------------------------------------------------------------------
# Kernels
# ----------------------------------------------------------------------------
def _gram_kernel(f_ref, g_ref, *, inv_denom, k_total, tile_k, nk_inner, need_mask):
    """Accumulate F_tile @ F_tile.T directly into the resident output block.

    Grid = (num_k_splits ["parallel"], reduction steps per split ["arbitrary"]).
    Each split writes its own (1, M, M) partial Gram, already scaled by 1/denom.
    """
    s = pl.program_id(0)   # K-split index (one per TensorCore on v7x)
    k = pl.program_id(1)   # reduction step within this split

    f = f_ref[...]                                     # (M, tile_k)
    if need_mask:
        # Ragged K tail and/or overshooting split steps: zero invalid columns.
        start = (s * nk_inner + k) * tile_k            # intended (unclamped) K offset
        col = lax.broadcasted_iota(jnp.int32, f.shape, 1)
        f = jnp.where(col < (k_total - start), f, 0.0)

    # F_tile @ F_tile.T without an explicit .T (contract axis 1 of both operands).
    p = lax.dot_general(f, f, (((1,), (1,)), ((), ())),
                        preferred_element_type=jnp.float32)

    @pl.when(k == 0)
    def _():
        g_ref[0] = p

    @pl.when(k > 0)
    def _():
        g_ref[0] += p

    @pl.when(k == nk_inner - 1)
    def _():
        g_ref[0] *= inv_denom


def _mse_kernel(g_ref, t_ref, loss_ref, *, inv_count):
    """mean((G - target)^2) over all M*M entries (F.mse_loss default)."""
    d = g_ref[...] - t_ref[...]
    loss_ref[0, 0] = jnp.sum(d * d) * inv_count


# ----------------------------------------------------------------------------
# Per-generation tiling heuristics
# ----------------------------------------------------------------------------
def _device_kind():
    try:
        return jax.devices()[0].device_kind.lower()
    except Exception:
        return ""


def _vmem_budget_bytes():
    """Scoped-VMEM budget to request, per TPU generation."""
    kind = _device_kind()
    if "v7" in kind:                       # v7x: 64 MiB physical VMEM per core
        return 48 * 1024 * 1024
    if "v5" in kind or "v6" in kind or "trillium" in kind:
        return 96 * 1024 * 1024            # v5e / v6e: 128 MiB physical VMEM
    return 32 * 1024 * 1024                # unknown: stay at the common default


def _pick_tile_k(m, k, itemsize, vmem_budget):
    """Largest 128-multiple K tile whose double-buffered footprint fits VMEM."""
    if k <= 128:
        return k                           # one block covering all of K
    # Per-step footprint ~ 2*m*tk*itemsize (double-buffered F tile)
    #                     + 2*m*m*4        (resident / buffered Gram block)
    #                     + headroom for semaphores & pipeline bookkeeping.
    avail = vmem_budget - 2 * m * m * 4 - (4 << 20)
    max_tk = max(avail // (2 * m * itemsize), 128)
    max_tk = max((max_tk // 128) * 128, 128)
    max_tk = min(max_tk, 4096)             # diminishing returns beyond this
    return max(min(max_tk, (k // 128) * 128), 128)


def _default_k_splits(nk_total):
    # v7x has 2 TensorCores per chip; split the reduction so both participate.
    if "v7" in _device_kind() and nk_total >= 4:
        return 2
    return 1


# ----------------------------------------------------------------------------
# Wrappers
# ----------------------------------------------------------------------------
def gram_matrix(x, *, tile_k=None, num_k_splits=None, compute_dtype=jnp.float32):
    """Pallas Gram matrix of an NCHW tensor -> (N*C, N*C) float32.

    G = (F @ F.T) / (N*C*H*W) with F = x.reshape(N*C, H*W), matching the
    PyTorch style-transfer `gram_matrix`.
    """
    n, c, h, w = x.shape
    m, k = n * c, h * w
    denom = float(n * c * h * w)

    f = x.reshape(m, k).astype(compute_dtype)   # metadata-only for contiguous NCHW f32
    itemsize = jnp.dtype(compute_dtype).itemsize

    budget = _vmem_budget_bytes()
    tk = int(tile_k) if tile_k is not None else _pick_tile_k(m, k, itemsize, budget)
    nk_total = -(-k // tk)                       # number of K blocks (ceil)

    nsplit = num_k_splits if num_k_splits is not None else _default_k_splits(nk_total)
    nsplit = max(1, min(int(nsplit), nk_total))
    nk_inner = -(-nk_total // nsplit)            # reduction steps per split
    need_mask = (nsplit * nk_inner * tk) != k    # ragged tail and/or overshoot steps

    def f_index_map(s, kk):
        # Clamp so an overshooting (fully masked) step never requests an
        # out-of-range block; the in-kernel mask zeroes its contribution.
        return (0, jnp.minimum(s * nk_inner + kk, nk_total - 1))

    partials = pl.pallas_call(
        functools.partial(
            _gram_kernel, inv_denom=1.0 / denom, k_total=k, tile_k=tk,
            nk_inner=nk_inner, need_mask=need_mask),
        out_shape=jax.ShapeDtypeStruct((nsplit, m, m), jnp.float32),
        grid_spec=pltpu.PrefetchScalarGridSpec(
            num_scalar_prefetch=0,
            grid=(nsplit, nk_inner),
            in_specs=[pl.BlockSpec((m, tk), f_index_map)],
            out_specs=pl.BlockSpec((1, m, m), lambda s, kk: (s, 0, 0)),
        ),
        compiler_params=pltpu.CompilerParams(
            dimension_semantics=("parallel", "arbitrary"),
            vmem_limit_bytes=budget),
    )(f)

    # Tiny epilogue: sum the (already 1/denom-scaled) per-split partial Grams.
    return jnp.sum(partials, axis=0)


def style_loss(x, target_gram, **gram_kwargs):
    """MSE(gram_matrix(x), target_gram) as a scalar float32 (mean reduction)."""
    g = gram_matrix(x, **gram_kwargs)
    m = g.shape[0]
    # Both (M, M) Gram matrices comfortably fit VMEM for typical style-transfer
    # feature maps (M = N*C <= ~512), so the MSE runs as one whole-array step
    # and the target never sits inside the per-step reduction pipeline.
    loss = pl.pallas_call(
        functools.partial(_mse_kernel, inv_count=1.0 / float(m * m)),
        out_shape=jax.ShapeDtypeStruct((1, 1), jnp.float32),
        in_specs=[pl.BlockSpec(memory_space=pltpu.MemorySpace.VMEM),
                  pl.BlockSpec(memory_space=pltpu.MemorySpace.VMEM)],
        out_specs=pl.BlockSpec(memory_space=pltpu.MemorySpace.VMEM),
    )(g, target_gram.astype(jnp.float32))
    return loss[0, 0]


class StyleLoss:
    """JAX/Pallas equivalent of the PyTorch StyleLoss module."""

    def __init__(self, target_feature):
        # .detach() in PyTorch -> stop_gradient here.
        self.target = jax.lax.stop_gradient(gram_matrix(target_feature))
        self.loss = None

    def forward(self, x):
        self.loss = style_loss(x, self.target)
        return x  # passthrough, like the PyTorch module

    __call__ = forward


# ----------------------------------------------------------------------------
# Reference (plain JAX) for sanity checks
# ----------------------------------------------------------------------------
def _gram_ref(x):
    n, c, h, w = x.shape
    f = x.reshape(n * c, h * w).astype(jnp.float32)
    return (f @ f.T) / float(n * c * h * w)


if __name__ == "__main__":
    key = jax.random.PRNGKey(0)
    k1, k2, k3 = jax.random.split(key, 3)

    # Small NCHW feature maps: batch=2, channels=4, spatial=16x16
    target_feature = jax.random.normal(k1, (2, 4, 16, 16), dtype=jnp.float32)
    x = jax.random.normal(k2, (2, 4, 16, 16), dtype=jnp.float32)

    module = StyleLoss(target_feature)
    out = module(x)
    out = jax.block_until_ready(out)
    loss = jax.block_until_ready(module.loss)

    # Correctness check against pure-JAX reference.
    g_ref_t = _gram_ref(target_feature)
    g_ref_x = _gram_ref(x)
    loss_ref = jnp.mean((g_ref_x - g_ref_t) ** 2)

    assert out.shape == x.shape and out.dtype == x.dtype
    assert jnp.allclose(out, x)
    assert jnp.allclose(module.target, g_ref_t, atol=1e-5, rtol=1e-5)
    assert jnp.allclose(loss, loss_ref, atol=1e-5, rtol=1e-5)

    # Extra validation 1: forced 2-way K split with an odd number of K blocks
    # (exercises the "parallel" split axis, the index-map clamp and the
    # fully-masked overshoot step) — runs on any generation.
    y = jax.random.normal(k3, (1, 8, 16, 24), dtype=jnp.float32)   # M=8, K=384
    g_split = jax.block_until_ready(gram_matrix(y, tile_k=128, num_k_splits=2))
    assert jnp.allclose(g_split, _gram_ref(y), atol=1e-5, rtol=1e-5)

    # Extra validation 2: ragged K tail without host-side padding (K=500).
    z = jax.random.normal(k3, (1, 8, 20, 25), dtype=jnp.float32)   # M=8, K=500
    g_ragged = jax.block_until_ready(gram_matrix(z, tile_k=256))
    assert jnp.allclose(g_ragged, _gram_ref(z), atol=1e-5, rtol=1e-5)

    print("KERNEL_OK")
</pallas_src>

<mosaic_0001>
module attributes {stable_mosaic.version = 11 : i64} {
  func.func @_gram_kernel(%arg0: i32, %arg1: i32, %arg2: memref<8x256xf32, #tpu.memory_space<vmem>>, %arg3: memref<1x8x8xf32, #tpu.memory_space<vmem>>) attributes {dimension_semantics = [#tpu.dimension_semantics<parallel>, #tpu.dimension_semantics<arbitrary>], iteration_bounds = array<i64: 1, 1>, scalar_prefetch = 0 : i64, scratch_operands = 0 : i64, tpu.core_type = #tpu.core_type<tc>, window_params = [{transform_indices = @transform_0, window_bounds = array<i64: 8, 256>}, {transform_indices = @transform_1, window_bounds = array<i64: 1, 8, 8>}]} {
    %c0 = arith.constant 0 : index
    %c0_0 = arith.constant 0 : index
    %0 = vector.load %arg2[%c0, %c0_0] : memref<8x256xf32, #tpu.memory_space<vmem>>, vector<8x256xf32>
    %cst = arith.constant dense<0.000000e+00> : vector<8x8xf32>
    %1 = tpu.matmul %0, %0, %cst {dimension_numbers = #tpu.dot_dimension_numbers<[1], [1], [0], [0], [0, 0, 1, 0], [], []>} : vector<8x256xf32>, vector<8x256xf32>, vector<8x8xf32> -> vector<8x8xf32>
    %c0_i32 = arith.constant 0 : i32
    %2 = arith.cmpi eq, %arg1, %c0_i32 : i32
    %3 = arith.extui %2 : i1 to i32
    %c0_i32_1 = arith.constant 0 : i32
    %4 = arith.cmpi ne, %3, %c0_i32_1 : i32
    scf.if %4 {
      %c0_6 = arith.constant 0 : index
      %c0_7 = arith.constant 0 : index
      %c0_8 = arith.constant 0 : index
      %11 = vector.load %arg3[%c0_6, %c0_7, %c0_8] : memref<1x8x8xf32, #tpu.memory_space<vmem>>, vector<1x8x8xf32>
      %12 = vector.shape_cast %11 : vector<1x8x8xf32> to vector<8x8xf32>
      %13 = vector.shape_cast %1 : vector<8x8xf32> to vector<1x8x8xf32>
      tpu.vector_store %arg3[%c0_6, %c0_7, %c0_8], %13 {strides = array<i32>} : memref<1x8x8xf32, #tpu.memory_space<vmem>>, vector<1x8x8xf32>,
    } else {
    }
    %c0_i32_2 = arith.constant 0 : i32
    %5 = arith.cmpi sgt, %arg1, %c0_i32_2 : i32
    %6 = arith.extui %5 : i1 to i32
    %c0_i32_3 = arith.constant 0 : i32
    %7 = arith.cmpi ne, %6, %c0_i32_3 : i32
    scf.if %7 {
      %c0_6 = arith.constant 0 : index
      %c0_7 = arith.constant 0 : index
      %c0_8 = arith.constant 0 : index
      %11 = vector.load %arg3[%c0_6, %c0_7, %c0_8] : memref<1x8x8xf32, #tpu.memory_space<vmem>>, vector<1x8x8xf32>
      %12 = vector.shape_cast %11 : vector<1x8x8xf32> to vector<8x8xf32>
      %13 = arith.addf %12, %1 : vector<8x8xf32>
      %c0_9 = arith.constant 0 : index
      %c0_10 = arith.constant 0 : index
      %c0_11 = arith.constant 0 : index
      %14 = vector.load %arg3[%c0_9, %c0_10, %c0_11] : memref<1x8x8xf32, #tpu.memory_space<vmem>>, vector<1x8x8xf32>
      %15 = vector.shape_cast %14 : vector<1x8x8xf32> to vector<8x8xf32>
      %16 = vector.shape_cast %13 : vector<8x8xf32> to vector<1x8x8xf32>
      tpu.vector_store %arg3[%c0_9, %c0_10, %c0_11], %16 {strides = array<i32>} : memref<1x8x8xf32, #tpu.memory_space<vmem>>, vector<1x8x8xf32>,
    } else {
    }
    %c0_i32_4 = arith.constant 0 : i32
    %8 = arith.cmpi eq, %arg1, %c0_i32_4 : i32
    %9 = arith.extui %8 : i1 to i32
    %c0_i32_5 = arith.constant 0 : i32
    %10 = arith.cmpi ne, %9, %c0_i32_5 : i32
    scf.if %10 {
      %c0_6 = arith.constant 0 : index
      %c0_7 = arith.constant 0 : index
      %c0_8 = arith.constant 0 : index
      %11 = vector.load %arg3[%c0_6, %c0_7, %c0_8] : memref<1x8x8xf32, #tpu.memory_space<vmem>>, vector<1x8x8xf32>
      %12 = vector.shape_cast %11 : vector<1x8x8xf32> to vector<8x8xf32>
      %cst_9 = arith.constant 4.8828125E-4 : f32
      %13 = vector.broadcast %cst_9 : f32 to vector<8x8xf32>
      %14 = arith.mulf %12, %13 : vector<8x8xf32>
      %c0_10 = arith.constant 0 : index
      %c0_11 = arith.constant 0 : index
      %c0_12 = arith.constant 0 : index
      %15 = vector.load %arg3[%c0_10, %c0_11, %c0_12] : memref<1x8x8xf32, #tpu.memory_space<vmem>>, vector<1x8x8xf32>
      %16 = vector.shape_cast %15 : vector<1x8x8xf32> to vector<8x8xf32>
      %17 = vector.shape_cast %14 : vector<8x8xf32> to vector<1x8x8xf32>
      tpu.vector_store %arg3[%c0_10, %c0_11, %c0_12], %17 {strides = array<i32>} : memref<1x8x8xf32, #tpu.memory_space<vmem>>, vector<1x8x8xf32>,
    } else {
    }
    return
  }
  func.func @transform_0(%arg0: i32, %arg1: i32) -> (i32, i32) {
    %c1_i32 = arith.constant 1 : i32
    %0 = arith.muli %arg0, %c1_i32 : i32
    %1 = arith.addi %0, %arg1 : i32
    %c0_i32 = arith.constant 0 : i32
    %2 = arith.minsi %1, %c0_i32 : i32
    %c0_i32_0 = arith.constant 0 : i32
    %c0_i32_1 = arith.constant 0 : i32
    return %c0_i32_0, %2 : i32, i32
  }
  func.func @transform_1(%arg0: i32, %arg1: i32) -> (i32, i32, i32) {
    %c0_i32 = arith.constant 0 : i32
    %c0_i32_0 = arith.constant 0 : i32
    %c0_i32_1 = arith.constant 0 : i32
    return %arg0, %c0_i32, %c0_i32_0 : i32, i32, i32
  }
}

</mosaic_0001>

<bundles_post_ra>
// kernel: tpu_custom_call.1
= control target key start
LH: loop header
LB: loop body
LE: loop exit
PB: predicated region body
PF: predicated region fallthrough
CT: control target
= control target key end

     0   :  { %6 = vsyncpa [#allocation3], 0  ;;  %s227_s0 = inlined_call_operand.hbm [shape: f32[8,256], index: 0, kind: input, shape index: {}]   ;;  %s228_s1 = inlined_call_operand.hbm [shape: f32[1,8,8], index: 1, kind: output, shape index: {}]  }
   0x1   :  { %7 = vsyncpa [#allocation4], 0  ;;  %s191_s6 = smov [#allocation2]   ;;  %s143_s10 = scalar_lea.hbm %s227_s0, 256 }
   0x2   :  { %s20_s7 = sshll.u32 %s191_s6, 4  ;;  %p144_p0 = scmp.ne.s32.totalorder %s227_s0, %s143_s10  ;;  %s21_s7 = int_to_ptr.vmem [resolvable:$true] %s20_s7 }
   0x3   :  { %p147_p1 = scmp.lt.u32.totalorder %s143_s10, %s227_s0 }
   0x5   :  { %p149_p2 = pnand %p147_p1, %p144_p0 }
   0x7   :  { %152 = shalt.err (!%p149_p2)
}
   0x8   :  { %s153_s15 = scalar_lea.vmem %s21_s7, 256  ;;  %p158_p4 = scmp.lt.s32.totalorder %s21_s7, %s21_s7 }
   0x9   :  { %p154_p3 = scmp.ne.s32.totalorder %s21_s7, %s153_s15  ;;  %p159_p5 = scmp.lt.s32.totalorder %s153_s15, %s153_s15 }
   0xb   :  { %p160_p6 = por %p159_p5, %p158_p4 }
   0xd   :  { %p161_p7 = pnand %p160_p6, %p154_p3 }
   0xf   :  { %164 = shalt.err (!%p161_p7)
}
  0x10   :  { %23 = dma.hbm_to_vmem [thread:$0]  %s227_s0, 256, %s21_s7, [#allocation3]  }
  0x11   :  { %187 = dma.done.wait [#allocation3], 256  }
  0x12   :  { %188 = vsyncadd [#allocation3], 4294967040  ;;  %v32_v0 = vld [vmem:[#allocation2 + $0x8] sm:$0xff]  ;;  %v31_v1 = vld [vmem:[#allocation2] sm:$0xff]  ;;  %vm107_vm0 = vcmask 64512   ;;  %s192_s18 = smov [#allocation5]  }
  0x13   :  { %33 = vmatprep.subr.mxu0 %v32_v0  ;;  %97 = vmatprep.mubr.f32.mxu0 %v32_v0  ;;  %s130_s19 = sshll.u32 %s192_s18, 4  ;;  %s131_s19 = int_to_ptr.vmem [resolvable:$true] %s130_s19 }
  0x14   :  { %34 = vmatpush1.xpose.msra.mxu0 %v31_v1  ;;  %s165_s20 = scalar_lea.vmem %s131_s19, 128  ;;  %p170_p9 = scmp.lt.s32.totalorder %s131_s19, %s131_s19 }
  0x15   :  { %p166_p8 = scmp.ne.s32.totalorder %s131_s19, %s165_s20  ;;  %p171_p10 = scmp.lt.s32.totalorder %s165_s20, %s165_s20 }
  0x17   :  { %98 = vmatmul.mubr.f32.vlgmr.msra.gmra.mrb[0].mxu0 %v31_v1  ;;  %p172_p11 = por %p171_p10, %p170_p9 }
  0x19   :  { %p173_p12 = pnand %p172_p11, %p166_p8 }
  0xea   :  { %v99_v2 = vpop.f32.mrb[0].mxu0 }
  0xeb   :  { %108 = vst.msk [vmem:[#allocation5] sm:$0xff] %vm107_vm0, %v99_v2  ;;  %v101_v3 = vpop.f32.mrb[1].mxu0 }
  0xf2   :  { %v120_v4 = vld [vmem:[#allocation5] sm:$0xff] }
  0xf3   :  { %v121_v5 = vmul.f32 0.00048828125, %v120_v4 }
  0xf5   :  { %123 = vst.msk [vmem:[#allocation5] sm:$0xff] %vm107_vm0, %v121_v5 }
  0xf6   :  { %176 = shalt.err (!%p173_p12)
}
  0xf7   :  { %s177_s22 = scalar_lea.hbm %s228_s1, 128 }
  0xf8   :  { %p178_p13 = scmp.ne.s32.totalorder %s228_s1, %s177_s22  ;;  %p181_p0 = scmp.lt.u32.totalorder %s177_s22, %s228_s1 }
  0xfa   :  { %p183_p1 = pnand %p181_p0, %p178_p13 }
  0xfc   :  { %186 = shalt.err (!%p183_p1)
}
  0xfd   :  { %133 = dma.vmem_to_hbm [thread:$0]  %s131_s19, 128, %s228_s1, [#allocation4]  }
  0xfe   :  { %189 = dma.done.wait [#allocation4], 128  }
  0xff   :  { %190 = vsyncadd [#allocation4], 4294967168 }
 0x100   :  { %137 = vsyncpa [#allocation3], 1 }
 0x101   :  { %138 = vsyncpa [#allocation4], 1 }

</bundles_post_ra>
